<compile_context>
chip_gen: v7x
topology: tpu7x:2x2x1
jax: 0.10.0
libtpu: 0.0.40
codegen_flags: <defaults>
</compile_context>

<pallas_src>
import functools

import jax
import jax.numpy as jnp
from jax import lax
from jax.experimental import pallas as pl
from jax.experimental.pallas import tpu as pltpu


def _round_up(x: int, m: int) -> int:
    return -(-x // m) * m


def _embedder_kernel(ids_ref,              # SMEM (S_pad,) int32  scalar-prefetched input_ids
                     we_hbm,               # ANY  (vocab, D)      word-embedding table (HBM)
                     pe_ref,               # VMEM (tS, D)         position-embedding rows (streamed)
                     tt_ref,               # VMEM (tS, 1) int32   token-type ids (streamed)
                     tok_ref,              # VMEM (n_tt, D)       token-type table (resident)
                     gamma_ref, beta_ref,  # VMEM (1, D)          LayerNorm affine (resident)
                     w_ref,                # VMEM (D, D) bf16     W^T (resident)
                     b_ref,                # VMEM (1, D)          Linear bias (resident)
                     o_ref,                # VMEM (tS, D)         output tile
                     we_buf,               # VMEM scratch (tS, D) gathered word-emb rows
                     sem,                  # DMA semaphore
                     *, eps, tS):
    base = pl.program_id(0) * tS

    def _row_copy(r):
        idx = ids_ref[base + r]
        return pltpu.make_async_copy(we_hbm.at[pl.ds(idx, 1), :],
                                     we_buf.at[pl.ds(r, 1), :],
                                     sem)

    # --- kick off the word-embedding row gather for this tile (HBM -> VMEM) ---
    def _start(r, carry):
        _row_copy(r).start()
        return carry
    lax.fori_loop(0, tS, _start, 0)

    # --- work independent of the gathered rows overlaps the DMAs ---------------
    pe = pe_ref[...].astype(jnp.float32)                       # (tS, D)
    ids_tt = tt_ref[...]                                       # (tS, 1) int32
    rows = tok_ref[...].astype(jnp.float32)                    # (n_tt, D), tiny
    te = rows[0:1, :]                                          # (1, D)
    for t in range(1, rows.shape[0]):                          # n_tt-1 selects
        te = jnp.where(ids_tt == t, rows[t:t + 1, :], te)      # (tS, D)
    pe_te = pe + te

    # --- wait for all row DMAs (same size/semaphore => byte-count waits) ------
    def _wait(r, carry):
        _row_copy(r).wait()
        return carry
    lax.fori_loop(0, tS, _wait, 0)

    # --- sum of the three embedding streams (f32) ------------------------------
    e = we_buf[...].astype(jnp.float32) + pe_te                # (tS, D)

    # --- LayerNorm over hidden dim (biased variance, like nn.LayerNorm) --------
    mean = jnp.mean(e, axis=-1, keepdims=True)
    centered = e - mean
    var = jnp.mean(centered * centered, axis=-1, keepdims=True)
    x = centered * lax.rsqrt(var + eps)
    x = x * gamma_ref[...] + beta_ref[...]

    # --- Linear: bf16 operands on the MXU, f32 accumulation --------------------
    y = jnp.dot(x.astype(jnp.bfloat16), w_ref[...],
                preferred_element_type=jnp.float32)
    y = y + b_ref[...]

    # Dropout (eval mode) == identity.
    o_ref[...] = y.astype(o_ref.dtype)


def prepare_embedder_params(params, *, stream_dtype=jnp.bfloat16):
    """One-time reshape / transpose / cast so the per-call path does no extra
    HBM round-trips (weight pre-transposed + bf16, streamed tables bf16)."""
    D = params["word_emb"].shape[1]
    return {
        # Word table stays f32: it is row-gathered in-kernel with per-row DMAs
        # and a (1, D) f32 row maps cleanly onto the (8, 128) VMEM tiling.
        "word_emb": params["word_emb"].astype(jnp.float32),
        "pos_emb": params["pos_emb"].astype(stream_dtype),
        "tok_emb": params["tok_emb"].astype(stream_dtype),
        "ln_gamma": params["ln_gamma"].reshape(1, D).astype(jnp.float32),
        "ln_beta": params["ln_beta"].reshape(1, D).astype(jnp.float32),
        "lin_w_t": params["lin_w"].T.astype(jnp.bfloat16),     # (D_in, D_out)
        "lin_b": params["lin_b"].reshape(1, D).astype(jnp.float32),
    }


def embedder_forward(input_ids, token_type_ids, prepared, *, eps=1e-12,
                     max_row_tile=1024, out_dtype=jnp.float32):
    """Runs the Embedder forward pass. Returns (1, S, D)."""
    S = int(input_ids.shape[0])
    vocab, D = prepared["word_emb"].shape
    n_tt = prepared["tok_emb"].shape[0]
    pe = prepared["pos_emb"]
    if S > pe.shape[0]:
        raise ValueError(f"seq len {S} > maximum_position_embeddings {pe.shape[0]}")

    # Row tile: multiple of 8 (sublane rule), >= 2 tiles when possible so both
    # v7x TensorCores get work, capped at max_row_tile (1024 fits v5e/v6e VMEM
    # comfortably; vmem_limit_bytes below is sized from the real footprint).
    max_row_tile = max(8, _round_up(max_row_tile, 8))
    S8 = _round_up(S, 8)
    half = _round_up(max(-(-S8 // 2), 8), 8)
    tS = min(max_row_tile, S8, half)
    S_pad = _round_up(S, tS)          # multiple of tS -> gather never reads OOB ids
    grid = (S_pad // tS,)

    if S_pad != S:
        input_ids = jnp.pad(input_ids, (0, S_pad - S))
        token_type_ids = jnp.pad(token_type_ids, (0, S_pad - S))
    input_ids = input_ids.astype(jnp.int32)
    tt2d = token_type_ids.reshape(S_pad, 1).astype(jnp.int32)
    if pe.shape[0] < S_pad:
        # Rare: only when rounding S up to a tile multiple overruns the table;
        # padded rows are sliced off after the call.
        pe = jnp.pad(pe, ((0, S_pad - pe.shape[0]), (0, 0)))

    # VMEM footprint (double-buffered streams + resident blocks + scratch).
    emb_bytes = jnp.dtype(pe.dtype).itemsize
    we_bytes = jnp.dtype(prepared["word_emb"].dtype).itemsize
    out_bytes = jnp.dtype(out_dtype).itemsize
    footprint = (tS * D * we_bytes            # gather scratch (single buffer)
                 + 2 * tS * D * emb_bytes     # pos_emb stream
                 + 2 * tS * 4                 # token-type id stream
                 + 2 * n_tt * D * emb_bytes   # resident token-type table
                 + 2 * 3 * D * 4              # gamma / beta / bias
                 + 2 * D * D * 2              # resident bf16 weight
                 + 2 * tS * D * out_bytes)    # output stream
    vmem_limit = int(min(max(2 * footprint + (8 << 20), 16 << 20), 100 << 20))

    kernel = functools.partial(_embedder_kernel, eps=eps, tS=tS)

    grid_spec = pltpu.PrefetchScalarGridSpec(
        num_scalar_prefetch=1,                                    # input_ids -> SMEM
        grid=grid,
        in_specs=[
            pl.BlockSpec(memory_space=pl.ANY),                    # word_emb table (HBM)
            pl.BlockSpec((tS, D), lambda i, ids: (i, 0)),         # pos_emb rows
            pl.BlockSpec((tS, 1), lambda i, ids: (i, 0)),         # token-type ids
            pl.BlockSpec((n_tt, D), lambda i, ids: (0, 0)),       # token-type table
            pl.BlockSpec((1, D), lambda i, ids: (0, 0)),          # gamma
            pl.BlockSpec((1, D), lambda i, ids: (0, 0)),          # beta
            pl.BlockSpec((D, D), lambda i, ids: (0, 0)),          # W^T (bf16)
            pl.BlockSpec((1, D), lambda i, ids: (0, 0)),          # bias
        ],
        out_specs=pl.BlockSpec((tS, D), lambda i, ids: (i, 0)),
        scratch_shapes=[pltpu.VMEM((tS, D), prepared["word_emb"].dtype),
                        pltpu.SemaphoreType.DMA(())],
    )

    out = pl.pallas_call(
        kernel,
        out_shape=jax.ShapeDtypeStruct((S_pad, D), out_dtype),
        grid_spec=grid_spec,
        compiler_params=pltpu.CompilerParams(
            dimension_semantics=("parallel",),
            vmem_limit_bytes=vmem_limit),
    )(input_ids, prepared["word_emb"], pe, tt2d, prepared["tok_emb"],
      prepared["ln_gamma"], prepared["ln_beta"],
      prepared["lin_w_t"], prepared["lin_b"])

    # PyTorch output carries the leading broadcast dim from position_ids[:, :S].
    return out[:S][None, :, :]                                    # (1, S, D)


def init_params(key, vocab_size, max_pos, n_token_types, D):
    ks = jax.random.split(key, 5)
    return {
        "word_emb": jax.random.normal(ks[0], (vocab_size, D), jnp.float32) * 0.02,
        "pos_emb": jax.random.normal(ks[1], (max_pos, D), jnp.float32) * 0.02,
        "tok_emb": jax.random.normal(ks[2], (n_token_types, D), jnp.float32) * 0.02,
        "ln_gamma": jnp.ones((D,), jnp.float32),
        "ln_beta": jnp.zeros((D,), jnp.float32),
        "lin_w": jax.random.normal(ks[3], (D, D), jnp.float32) * 0.02,   # (out, in)
        "lin_b": jax.random.normal(ks[4], (D,), jnp.float32) * 0.02,
    }


def _reference_forward(input_ids, token_type_ids, params, eps=1e-12):
    """Pure-JAX f32 reference for correctness checking."""
    S = input_ids.shape[0]
    e = (jnp.take(params["word_emb"], input_ids, axis=0)
         + jnp.take(params["pos_emb"], jnp.arange(S), axis=0)
         + jnp.take(params["tok_emb"], token_type_ids, axis=0))
    mean = jnp.mean(e, axis=-1, keepdims=True)
    var = jnp.mean((e - mean) ** 2, axis=-1, keepdims=True)
    x = (e - mean) / jnp.sqrt(var + eps)
    x = x * params["ln_gamma"] + params["ln_beta"]
    y = x @ params["lin_w"].T + params["lin_b"]
    return y[None, :, :]


if __name__ == "__main__":
    # Small config: vocab=100, max_pos=64, token_types=2, hidden=32, seq=8.
    VOCAB, MAX_POS, N_TT, D, S = 100, 64, 2, 32, 8

    key = jax.random.PRNGKey(0)
    kp, ki, kt = jax.random.split(key, 3)
    params = init_params(kp, VOCAB, MAX_POS, N_TT, D)
    prepared = prepare_embedder_params(params)

    input_ids = jax.random.randint(ki, (S,), 0, VOCAB, dtype=jnp.int32)
    token_type_ids = jax.random.randint(kt, (S,), 0, N_TT, dtype=jnp.int32)

    out = embedder_forward(input_ids, token_type_ids, prepared)
    out = jax.block_until_ready(out)

    ref = _reference_forward(input_ids, token_type_ids, params)
    assert out.shape == (1, S, D), out.shape
    # bf16 pos/tok streams + bf16 MXU matmul (f32 accumulation) => loose-ish tol.
    assert jnp.allclose(out, ref, atol=2e-2, rtol=2e-2), "mismatch vs reference"

    print("KERNEL_OK")
</pallas_src>

<mosaic_0001>
module attributes {stable_mosaic.version = 11 : i64} {
  func.func @_embedder_kernel(%arg0: i32, %arg1: memref<8xi32, #tpu.memory_space<smem>>, %arg2: memref<100x32xf32, #tpu.memory_space<any>>, %arg3: memref<8x32xbf16, #tpu.memory_space<vmem>>, %arg4: memref<8x1xi32, #tpu.memory_space<vmem>>, %arg5: memref<2x32xbf16, #tpu.memory_space<vmem>>, %arg6: memref<1x32xf32, #tpu.memory_space<vmem>>, %arg7: memref<1x32xf32, #tpu.memory_space<vmem>>, %arg8: memref<32x32xbf16, #tpu.memory_space<vmem>>, %arg9: memref<1x32xf32, #tpu.memory_space<vmem>>, %arg10: memref<8x32xf32, #tpu.memory_space<vmem>>, %arg11: memref<8x32xf32, #tpu.memory_space<vmem>>, %arg12: memref<!tpu.dma_semaphore, #tpu.memory_space<semaphore_mem>>) attributes {dimension_semantics = [#tpu.dimension_semantics<parallel>], iteration_bounds = array<i64: 1>, scalar_prefetch = 1 : i64, scratch_operands = 2 : i64, tpu.core_type = #tpu.core_type<tc>, window_params = [{}, {transform_indices = @transform_1, window_bounds = array<i64: 8, 32>}, {transform_indices = @transform_2, window_bounds = array<i64: 8, 1>}, {pipeline_mode = #tpu.pipeline_mode<synchronous>, transform_indices = @transform_3, window_bounds = array<i64: 2, 32>}, {pipeline_mode = #tpu.pipeline_mode<synchronous>, transform_indices = @transform_4, window_bounds = array<i64: 1, 32>}, {pipeline_mode = #tpu.pipeline_mode<synchronous>, transform_indices = @transform_5, window_bounds = array<i64: 1, 32>}, {pipeline_mode = #tpu.pipeline_mode<synchronous>, transform_indices = @transform_6, window_bounds = array<i64: 32, 32>}, {pipeline_mode = #tpu.pipeline_mode<synchronous>, transform_indices = @transform_7, window_bounds = array<i64: 1, 32>}, {transform_indices = @transform_8, window_bounds = array<i64: 8, 32>}]} {
    %c8_i32 = arith.constant 8 : i32
    %0 = arith.muli %arg0, %c8_i32 : i32
    %c0_i32 = arith.constant 0 : i32
    %c8_i32_0 = arith.constant 8 : i32
    %1 = arith.addi %c0_i32, %c8_i32_0 : i32
    %c1_i32 = arith.constant 1 : i32
    scf.for %arg13 = %c0_i32 to %1 step %c1_i32  : i32 {
      %51 = arith.addi %0, %arg13 : i32
      %52 = arith.index_cast %51 : i32 to index
      %53 = memref.load %arg1[%52] : memref<8xi32, #tpu.memory_space<smem>>
      %c0_i32_29 = arith.constant 0 : i32
      %54 = tpu.memref_slice %arg2[%53, %c0_i32_29] : memref<100x32xf32, #tpu.memory_space<any>> -> memref<1x32xf32, #tpu.memory_space<any>>
      %c0_i32_30 = arith.constant 0 : i32
      %55 = tpu.memref_slice %arg11[%arg13, %c0_i32_30] : memref<8x32xf32, #tpu.memory_space<vmem>> -> memref<1x32xf32, #tpu.memory_space<vmem>>
      tpu.enqueue_dma source(%54 : memref<1x32xf32, #tpu.memory_space<any>>) target(%55 : memref<1x32xf32, #tpu.memory_space<vmem>>) target_semaphore(%arg12 : memref<!tpu.dma_semaphore, #tpu.memory_space<semaphore_mem>>)
    }
    %c8_i32_1 = arith.constant 8 : i32
    %c0 = arith.constant 0 : index
    %c0_2 = arith.constant 0 : index
    %2 = vector.load %arg3[%c0, %c0_2] : memref<8x32xbf16, #tpu.memory_space<vmem>>, vector<8x32xbf16>
    %3 = arith.extf %2 : vector<8x32xbf16> to vector<8x32xf32>
    %c0_3 = arith.constant 0 : index
    %c0_4 = arith.constant 0 : index
    %4 = vector.load %arg4[%c0_3, %c0_4] : memref<8x1xi32, #tpu.memory_space<vmem>>, vector<8x1xi32>
    %c0_5 = arith.constant 0 : index
    %c0_6 = arith.constant 0 : index
    %5 = vector.load %arg5[%c0_5, %c0_6] : memref<2x32xbf16, #tpu.memory_space<vmem>>, vector<2x32xbf16>
    %6 = arith.extf %5 : vector<2x32xbf16> to vector<2x32xf32>
    %7 = vector.extract_strided_slice %6 {offsets = [0, 0], sizes = [1, 32], strides = [1, 1]} : vector<2x32xf32> to vector<1x32xf32>
    %c1_i32_7 = arith.constant 1 : i32
    %8 = vector.broadcast %c1_i32_7 : i32 to vector<8x1xi32>
    %9 = arith.cmpi eq, %4, %8 : vector<8x1xi32>
    %10 = vector.extract_strided_slice %6 {offsets = [1, 0], sizes = [1, 32], strides = [1, 1]} : vector<2x32xf32> to vector<1x32xf32>
    %11 = vector.shape_cast %9 : vector<8x1xi1> to vector<8x1xi1>
    %12 = vector.broadcast %11 : vector<8x1xi1> to vector<8x32xi1>
    %13 = vector.shape_cast %10 : vector<1x32xf32> to vector<1x32xf32>
    %14 = vector.broadcast %13 : vector<1x32xf32> to vector<8x32xf32>
    %15 = vector.shape_cast %7 : vector<1x32xf32> to vector<1x32xf32>
    %16 = vector.broadcast %15 : vector<1x32xf32> to vector<8x32xf32>
    %17 = arith.select %12, %14, %16 : vector<8x32xi1>, vector<8x32xf32>
    %18 = arith.addf %3, %17 : vector<8x32xf32>
    %c0_i32_8 = arith.constant 0 : i32
    %c8_i32_9 = arith.constant 8 : i32
    %19 = arith.addi %c0_i32_8, %c8_i32_9 : i32
    %c1_i32_10 = arith.constant 1 : i32
    scf.for %arg13 = %c0_i32_8 to %19 step %c1_i32_10  : i32 {
      %51 = arith.addi %0, %arg13 : i32
      %52 = arith.index_cast %51 : i32 to index
      %53 = memref.load %arg1[%52] : memref<8xi32, #tpu.memory_space<smem>>
      %c0_i32_29 = arith.constant 0 : i32
      %54 = tpu.memref_slice %arg2[%53, %c0_i32_29] : memref<100x32xf32, #tpu.memory_space<any>> -> memref<1x32xf32, #tpu.memory_space<any>>
      %c0_i32_30 = arith.constant 0 : i32
      %55 = tpu.memref_slice %arg11[%arg13, %c0_i32_30] : memref<8x32xf32, #tpu.memory_space<vmem>> -> memref<1x32xf32, #tpu.memory_space<vmem>>
      tpu.wait_dma2 semaphore(%arg12 : memref<!tpu.dma_semaphore, #tpu.memory_space<semaphore_mem>>) src(%54 : memref<1x32xf32, #tpu.memory_space<any>>) dst(%55 : memref<1x32xf32, #tpu.memory_space<vmem>>)
    }
    %c8_i32_11 = arith.constant 8 : i32
    %c0_12 = arith.constant 0 : index
    %c0_13 = arith.constant 0 : index
    %20 = vector.load %arg11[%c0_12, %c0_13] : memref<8x32xf32, #tpu.memory_space<vmem>>, vector<8x32xf32>
    %21 = arith.addf %20, %18 : vector<8x32xf32>
    %cst = arith.constant dense<0.000000e+00> : vector<8xf32>
    %22 = vector.multi_reduction <add>, %21, %cst [1] : vector<8x32xf32> to vector<8xf32>
    %23 = vector.shape_cast %22 : vector<8xf32> to vector<8x1xf32>
    %cst_14 = arith.constant 3.200000e+01 : f32
    %24 = vector.broadcast %cst_14 : f32 to vector<8x1xf32>
    %25 = arith.divf %23, %24 : vector<8x1xf32>
    %26 = vector.broadcast %25 : vector<8x1xf32> to vector<8x32xf32>
    %27 = arith.subf %21, %26 : vector<8x32xf32>
    %28 = arith.mulf %27, %27 : vector<8x32xf32>
    %cst_15 = arith.constant dense<0.000000e+00> : vector<8xf32>
    %29 = vector.multi_reduction <add>, %28, %cst_15 [1] : vector<8x32xf32> to vector<8xf32>
    %30 = vector.shape_cast %29 : vector<8xf32> to vector<8x1xf32>
    %cst_16 = arith.constant 3.200000e+01 : f32
    %31 = vector.broadcast %cst_16 : f32 to vector<8x1xf32>
    %32 = arith.divf %30, %31 : vector<8x1xf32>
    %cst_17 = arith.constant 9.99999996E-13 : f32
    %33 = vector.broadcast %cst_17 : f32 to vector<8x1xf32>
    %34 = arith.addf %32, %33 : vector<8x1xf32>
    %35 = math.rsqrt %34 : vector<8x1xf32>
    %36 = vector.broadcast %35 : vector<8x1xf32> to vector<8x32xf32>
    %37 = arith.mulf %27, %36 : vector<8x32xf32>
    %c0_18 = arith.constant 0 : index
    %c0_19 = arith.constant 0 : index
    %38 = vector.load %arg6[%c0_18, %c0_19] : memref<1x32xf32, #tpu.memory_space<vmem>>, vector<1x32xf32>
    %39 = vector.broadcast %38 : vector<1x32xf32> to vector<8x32xf32>
    %40 = arith.mulf %37, %39 : vector<8x32xf32>
    %c0_20 = arith.constant 0 : index
    %c0_21 = arith.constant 0 : index
    %41 = vector.load %arg7[%c0_20, %c0_21] : memref<1x32xf32, #tpu.memory_space<vmem>>, vector<1x32xf32>
    %42 = vector.broadcast %41 : vector<1x32xf32> to vector<8x32xf32>
    %43 = arith.addf %40, %42 : vector<8x32xf32>
    %44 = arith.truncf %43 : vector<8x32xf32> to vector<8x32xbf16>
    %c0_22 = arith.constant 0 : index
    %c0_23 = arith.constant 0 : index
    %45 = vector.load %arg8[%c0_22, %c0_23] : memref<32x32xbf16, #tpu.memory_space<vmem>>, vector<32x32xbf16>
    %cst_24 = arith.constant dense<0.000000e+00> : vector<8x32xf32>
    %46 = tpu.matmul %44, %45, %cst_24 {dimension_numbers = #tpu.dot_dimension_numbers<[1], [0], [0], [1], [0, 0, 1, 1], [], []>} : vector<8x32xbf16>, vector<32x32xbf16>, vector<8x32xf32> -> vector<8x32xf32>
    %c0_25 = arith.constant 0 : index
    %c0_26 = arith.constant 0 : index
    %47 = vector.load %arg9[%c0_25, %c0_26] : memref<1x32xf32, #tpu.memory_space<vmem>>, vector<1x32xf32>
    %48 = vector.broadcast %47 : vector<1x32xf32> to vector<8x32xf32>
    %49 = arith.addf %46, %48 : vector<8x32xf32>
    %c0_27 = arith.constant 0 : index
    %c0_28 = arith.constant 0 : index
    %50 = vector.load %arg10[%c0_27, %c0_28] : memref<8x32xf32, #tpu.memory_space<vmem>>, vector<8x32xf32>
    tpu.vector_store %arg10[%c0_27, %c0_28], %49 {strides = array<i32>} : memref<8x32xf32, #tpu.memory_space<vmem>>, vector<8x32xf32>,
    return
  }
  func.func @transform_1(%arg0: i32, %arg1: memref<8xi32, #tpu.memory_space<smem>>) -> (i32, i32) {
    %c0_i32 = arith.constant 0 : i32
    %c0_i32_0 = arith.constant 0 : i32
    return %arg0, %c0_i32 : i32, i32
  }
  func.func @transform_2(%arg0: i32, %arg1: memref<8xi32, #tpu.memory_space<smem>>) -> (i32, i32) {
    %c0_i32 = arith.constant 0 : i32
    %c0_i32_0 = arith.constant 0 : i32
    return %arg0, %c0_i32 : i32, i32
  }
  func.func @transform_3(%arg0: i32, %arg1: memref<8xi32, #tpu.memory_space<smem>>) -> (i32, i32) {
    %c0_i32 = arith.constant 0 : i32
    %c0_i32_0 = arith.constant 0 : i32
    %c0_i32_1 = arith.constant 0 : i32
    return %c0_i32, %c0_i32_0 : i32, i32
  }
  func.func @transform_4(%arg0: i32, %arg1: memref<8xi32, #tpu.memory_space<smem>>) -> (i32, i32) {
    %c0_i32 = arith.constant 0 : i32
    %c0_i32_0 = arith.constant 0 : i32
    %c0_i32_1 = arith.constant 0 : i32
    return %c0_i32, %c0_i32_0 : i32, i32
  }
  func.func @transform_5(%arg0: i32, %arg1: memref<8xi32, #tpu.memory_space<smem>>) -> (i32, i32) {
    %c0_i32 = arith.constant 0 : i32
    %c0_i32_0 = arith.constant 0 : i32
    %c0_i32_1 = arith.constant 0 : i32
    return %c0_i32, %c0_i32_0 : i32, i32
  }
  func.func @transform_6(%arg0: i32, %arg1: memref<8xi32, #tpu.memory_space<smem>>) -> (i32, i32) {
    %c0_i32 = arith.constant 0 : i32
    %c0_i32_0 = arith.constant 0 : i32
    %c0_i32_1 = arith.constant 0 : i32
    return %c0_i32, %c0_i32_0 : i32, i32
  }
  func.func @transform_7(%arg0: i32, %arg1: memref<8xi32, #tpu.memory_space<smem>>) -> (i32, i32) {
    %c0_i32 = arith.constant 0 : i32
    %c0_i32_0 = arith.constant 0 : i32
    %c0_i32_1 = arith.constant 0 : i32
    return %c0_i32, %c0_i32_0 : i32, i32
  }
  func.func @transform_8(%arg0: i32, %arg1: memref<8xi32, #tpu.memory_space<smem>>) -> (i32, i32) {
    %c0_i32 = arith.constant 0 : i32
    %c0_i32_0 = arith.constant 0 : i32
    return %arg0, %c0_i32 : i32, i32
  }
}

</mosaic_0001>

<bundles_post_ra>
// kernel: tpu_custom_call.1
= control target key start
LH: loop header
LB: loop body
LE: loop exit
PB: predicated region body
PF: predicated region fallthrough
CT: control target
= control target key end

     0   :  { %s467_s0 = inlined_call_operand.vmem [shape: s32[8], index: 0, kind: input, shape index: {}]   ;;  %s468_s1 = inlined_call_operand.vmem [shape: f32[100,32], index: 1, kind: input, shape index: {}]   ;;  %s469_s2 = inlined_call_operand.vmem [shape: bf16[64,32], index: 2, kind: input, shape index: {}]   ;;  %s470_s3 = inlined_call_operand.vmem [shape: s32[8,1], index: 3, kind: input, shape index: {}]   ;;  %s471_s4 = inlined_call_operand.vmem [shape: bf16[2,32], index: 4, kind: input, shape index: {}]   ;;  %s472_s5 = inlined_call_operand.vmem [shape: f32[1,32], index: 5, kind: input, shape index: {}]   ;;  %s473_s6 = inlined_call_operand.vmem [shape: f32[1,32], index: 6, kind: input, shape index: {}]   ;;  %s474_s7 = inlined_call_operand.vmem [shape: bf16[32,32], index: 7, kind: input, shape index: {}]   ;;  %s475_s8 = inlined_call_operand.vmem [shape: f32[1,32], index: 8, kind: input, shape index: {}]   ;;  %s476_s9 = inlined_call_operand.hbm [shape: f32[8,32], index: 9, kind: output, shape index: {}]  }
   0x1   :  { %s14_s11 = sshll.u32 %s467_s0, 4  ;;  %s15_s11 = int_to_ptr.vmem [resolvable:$true] %s14_s11 }
   0x2   :  { %s310_s12 = scalar_lea.vmem %s15_s11, 16  ;;  %p315_p1 = scmp.lt.s32.totalorder %s15_s11, %s15_s11 }
   0x3   :  { %p311_p0 = scmp.ne.s32.totalorder %s15_s11, %s310_s12  ;;  %p316_p2 = scmp.lt.s32.totalorder %s310_s12, %s310_s12 }
   0x5   :  { %p317_p3 = por %p316_p2, %p315_p1 }
   0x7   :  { %p318_p4 = pnand %p317_p3, %p311_p0 }
   0x9   :  { %321 = shalt.err (!%p318_p4)  }
   0xa   :  { %s366_s13 = smov [#allocation5]  }
   0xb   :  { %17 = dma.vmem_to_smem %s15_s11, 16, %s366_s13, [#allocation4] }
   0xc   :  { %352 = dma.done.wait [#allocation4], 16 }
   0xd   :  { %353 = vsyncadd [#allocation4], 4294967280 }
   0xe   :  { %19 = sfence }
   0xf   :  { %20 = vsyncpa [#allocation7], 0  ;;  %s358_s14 = smov 0  }
  0x10 LB: > { %s44_s15 = sld [smem:[#allocation5 + %s360_s14]]  ;;  %s46_s18 = scalar_lea.vmem [#allocation2], %s360_s14  ;;  %s360_s14 = sphi %s358_s14, %s42_s14  }
  0x16   : > { %s45_s17 = scalar_lea.vmem %s468_s1, %s44_s15 }
  0x17   : > { %v64_v0 = vld [vmem:[%s45_s17] sm:$0x1] }
  0x18   : > { %65 = vst [vmem:[%s46_s18] sm:$0x1] %v64_v0 }
  0x19   : > { %90 = vsyncadd [#allocation3], 16  ;;  %s42_s14 = sadd.s32 1, %s360_s14  }
  0x1a   : > { %p39_p5 = scmp.ge.s32.totalorder %s42_s14, 8  }
  0x1b   :  { %v93_v1 = vld [vmem:[%s470_s3] sm:$0xff] (%p39_p5)  ;;  %v367_v2 = vmov (%p39_p5), 0   ;;  %v102_v4 = vlaneseq (%p39_p5)  ;;  %s362_s1 = smov (%p39_p5), 0  }
  0x1c   :  { %41 = sbr.rel (!%p39_p5) target bundleno = 16 (0x10), region = 104  ;;  %305 = vset.pattern.permute.xlu0 (%p39_p5), %v367_v2  ;;  %vm96_vm0 = vcmp.eq.s32.totalorder (%p39_p5), %v93_v1, 1  ;;  %v94_v6 = vld [vmem:[%s471_s4] sm:$0x1] (%p39_p5) }
  0x1d   :  { %v97_v3 = vsel (%p39_p5), %vm96_vm0, 1, %v367_v2  ;;  %v103_v5 = vshrl.u32 (%p39_p5), %v102_v4, 7  ;;  %v95_v7 = vunpack.c.l.bf16 (%p39_p5), %v94_v6  ;;  %v91_v10 = vld [vmem:[%s469_s2] sm:$0xf] (%p39_p5) }
  0x1e   :  { %99 = vperm.xlu0 (%p39_p5), %305, %v97_v3   ;;  %v92_v13 = vunpack.c.l.bf16 (%p39_p5), %v91_v10 }
  0x1f   :  { %v104_v8 = vsub.s32 (%p39_p5), 1, %v103_v5  ;;  %v108_v9 = vsub.s32 (%p39_p5), 0, %v103_v5 }
  0x21   :  { %v105_v11 = vrot.slane (%p39_p5), %v95_v7, %v104_v8  ;;  %v109_v12 = vrot.slane (%p39_p5), %v95_v7, %v108_v9 }
  0x9d   :  { %v100_v14 = vpop.permute.xlu0 %99 }
  0x9e   :  { %vm101_vm1 = vcmp.eq.s32.totalorder %v100_v14, 1 }
  0x9f   :  { %v110_v15 = vsel %vm101_vm1, %v105_v11, %v109_v12 }
  0xa0   :  { %v111_v16 = vadd.f32 %v110_v15, %v92_v13 }
  0xa1 LB: > { %354 = dma.done.wait [#allocation3], 16  ;;  %s364_s1 = sphi %s362_s1, %s117_s1  }
  0xa2   : > { %355 = vsyncadd [#allocation3], 4294967280  ;;  %s117_s1 = sadd.s32 1, %s364_s1  }
  0xa3   : > { %p114_p6 = scmp.ge.s32.totalorder %s117_s1, 8  }
  0xa4   :  { %v123_v17 = vld [vmem:[#allocation2] sm:$0xff] (%p114_p6)  ;;  %vm125_vm2 = vcmask (%p114_p6), 261120   ;;  %v368_v26 = vmov (%p114_p6), 0.0   ;;  %v307_v27 = vld [vmem:[%s474_s7 + $0x8] sm:$0xff] (%p114_p6)   ;;  %vm369_vm3 = vmmov (%p114_p6), 0   ;;  %s370_s10 = smov (%p114_p6), [#allocation6]  }
  0xa5   :  { %116 = sbr.rel (!%p114_p6) target bundleno = 161 (0xa1), region = 115  ;;  %v124_v18 = vadd.f32 (%p114_p6), %v123_v17, %v111_v16  ;;  %v306_v25 = vld [vmem:[%s474_s7] sm:$0xff] (%p114_p6)   ;;  %276 = vmatprep.subr.bf16.mxu0 (%p114_p6), %v368_v26  ;;  %280 = vmatprep.mubr.msk.bf16.mxu0 (%p114_p6), %vm369_vm3, %v368_v26  ;;  %s230_s11 = sshll.u32 (%p114_p6), %s370_s10, 4  ;;  %s231_s11 = int_to_ptr.vmem [resolvable:$true] %s230_s11 }
  0xa6   :  { %277 = vmatpush3.bf16.msra.mxu0 (%p114_p6), %v306_v25  ;;  %v266_v32 = vld [vmem:[%s472_s5] ss:$0 sm:$0xff] (%p114_p6)  ;;  %s322_s5 = scalar_lea.vmem (%p114_p6), %s231_s11, 128  ;;  %p327_p8 = scmp.lt.s32.totalorder (%p114_p6), %s231_s11, %s231_s11 }
  0xa7   :  { %v126_v19 = vsel (%p114_p6), %vm125_vm2, %v124_v18, 0.0  ;;  %278 = vmatprep.subr.bf16.mxu0 (%p114_p6), %v368_v26  ;;  %v267_v34 = vld [vmem:[%s473_s6] ss:$0 sm:$0xff] (%p114_p6)  ;;  %p323_p7 = scmp.ne.s32.totalorder (%p114_p6), %s231_s11, %s322_s5  ;;  %p328_p9 = scmp.lt.s32.totalorder (%p114_p6), %s322_s5, %s322_s5 }
  0xa8   :  { %127 = vadd.xlane.f32.xlu0 (%p114_p6), %v126_v19  ;;  %v268_v38 = vld [vmem:[%s475_s8] ss:$0 sm:$0xff] (%p114_p6) }
  0xa9   :  { %p329_p10 = por (%p114_p6), %p328_p9, %p327_p8 }
  0xaa   :  { %279 = vmatpush3.bf16.msra.mxu0 (%p114_p6), %v307_v27 }
  0xab   :  { %p330_p11 = pnand (%p114_p6), %p329_p10, %p323_p7 }
 0x135   :  { %v128_v20 = vpop.xlane.xlu0 %127 }
 0x136   :  { %v130_v21 = vmul.f32 0.03125, %v128_v20 }
 0x138   :  { %v131_v22 = vsub.f32 %v124_v18, %v130_v21 }
 0x13a   :  { %v132_v23 = vmul.f32 %v131_v22, %v131_v22 }
 0x13c   :  { %v133_v24 = vsel %vm125_vm2, %v132_v23, 0.0 }
 0x13d   :  { %134 = vadd.xlane.f32.xlu0 %v133_v24 }
 0x1ca   :  { %v135_v28 = vpop.xlane.xlu0 %134 }
 0x1cb   :  { %v136_v29 = vmul.f32 0.03125, %v135_v28 }
 0x1cd   :  { %v137_v30 = vadd.f32 1e-12, %v136_v29 }
 0x1cf   :  { %308 = vrsqrt.f32 %v137_v30 }
 0x1d9   :  { %v309_v31 = vpop.eup %308 }
 0x1da   :  { %v139_v33 = vmul.f32 %v309_v31, %v131_v22 }
 0x1dc   :  { %v147_v35 = vmul.f32 %v266_v32, %v139_v33 }
 0x1de   :  { %v155_v36 = vadd.f32 %v267_v34, %v147_v35 }
 0x1e0   :  { %v156_v37 = vpack.c.bf16 %v155_v36, %v155_v36 }
 0x1e2   :  { %281 = vmatmul.mubr.msk.bf16.vlgmr.msra.gmra.mrb[0].mxu0 %vm125_vm2, %v156_v37 }
 0x2b5   :  { %v217_v39 = vpop.f32.mrb[0].mxu0 }
 0x2b6   :  { %v218_v40 = vadd.f32 %v268_v38, %v217_v39  ;;  %v282_v41 = vpop.f32.mrb[1].mxu0 }
 0x2b7   :  { %v220_v42 = vpop.f32.mrb[2].mxu0 }
 0x2b8   :  { %223 = vst.msk [vmem:[#allocation6] sm:$0xff] %vm125_vm2, %v218_v40  ;;  %v283_v43 = vpop.f32.mrb[3].mxu0 }
 0x2b9   :  { %333 = shalt.err (!%p330_p11)
}
 0x2ba   :  { %s334_s8 = scalar_lea.hbm %s476_s9, 128 }
 0x2bb   :  { %p335_p12 = scmp.ne.s32.totalorder %s476_s9, %s334_s8  ;;  %p338_p13 = scmp.lt.u32.totalorder %s334_s8, %s476_s9 }
 0x2bd   :  { %p340_p0 = pnand %p338_p13, %p335_p12 }
 0x2bf   :  { %343 = shalt.err (!%p340_p0)
}
 0x2c0   :  { %233 = dma.vmem_to_hbm [thread:$0]  %s231_s11, 128, %s476_s9, [#allocation7]  }
 0x2c1   :  { %356 = dma.done.wait [#allocation7], 128  }
 0x2c2   :  { %357 = vsyncadd [#allocation7], 4294967168 }
 0x2c3   :  { %237 = vsyncpa [#allocation7], 1 }
 0x2c4   :  { %238 = vsyncmov [#allocation3] }
 0x2c7   :  { %s239_s18 = vpop.sfrf %238 }
 0x2c8   :  { %p272_p1 = scmp.ne.s32.totalorder %s239_s18, 0 }
 0x2ca   :  { %243 = shalt.err (%p272_p1)  }

</bundles_post_ra>
